<compile_context>
chip_gen: v7x
topology: tpu7x:2x2x1
jax: 0.10.0
libtpu: 0.0.40
codegen_flags: <defaults>
</compile_context>

<pallas_src>
import jax
import jax.numpy as jnp
from jax import lax
from jax.experimental import pallas as pl
from jax.experimental.pallas import tpu as pltpu


LANES = 256                            # multiple of 128 -> unmasked lane-dense stores
TARGET_BLOCK_BYTES = 4 * 1024 * 1024   # ~4 MiB per (larger-dtype) block buffer
MIN_SPLIT_BLOCK_BYTES = 512 * 1024     # don't split mid-size slabs below this
VMEM_LIMIT_BYTES = 48 * 1024 * 1024    # covers 2-in + 2-out double buffering everywhere
TINY_N_FALLBACK = 512                  # below this, plain XLA fusion wins


def _round_up(a, b):
    return -(-a // b) * b


def _min_sublanes(dtype):
    """Minimum sublane count for an unpacked/native tile of this dtype."""
    size = jnp.dtype(dtype).itemsize
    if size >= 4:
        return 8
    if size == 2:
        return 16
    return 32


def _tensorcores_per_device():
    """Best-effort TensorCores-per-JAX-device (megacore / dual-TC parts)."""
    try:
        kind = jax.devices()[0].device_kind.lower()
    except Exception:  # pragma: no cover - defensive
        return 1
    if "v5e" in kind or "lite" in kind or "v6" in kind:
        return 1
    if "v4" in kind or "v5p" in kind or "v7" in kind or "7x" in kind:
        return 2
    return 1


def _sin_atan_kernel(x_ref, o_ref):
    # Upcast in-kernel (DMA stays in the native input dtype, incl. integers).
    x = x_ref[...].astype(jnp.float32)
    # Clamp so x*x cannot overflow to inf; sin(atan(x)) is exactly +/-1.0 in
    # f32 long before |x| reaches 1e18, so this is bit-identical.  NaN still
    # propagates through the clip (max/min propagate NaN).
    x = jnp.clip(x, -1e18, 1e18)
    y = x * lax.rsqrt(1.0 + x * x)           # rsqrt -> EUP slot (otherwise idle)
    o_ref[...] = y.astype(o_ref.dtype)


def continuous_function(x, *, block_bytes=TARGET_BLOCK_BYTES):
    """y = sin(atan(x)), elementwise. x: array of any shape (e.g. NCHW)."""
    orig_shape = x.shape
    orig_dtype = x.dtype
    n = x.size

    # dtype policy (torch parity: non-floating inputs promote to float32).
    restore_dtype = None
    if jnp.issubdtype(orig_dtype, jnp.floating):
        if jnp.dtype(orig_dtype).itemsize > 4:
            # TODO(synk): TPU has no native f64 path; compute in f32, cast back.
            x = x.astype(jnp.float32)
            out_dtype = jnp.float32
            restore_dtype = orig_dtype
        else:
            out_dtype = orig_dtype
    elif jnp.issubdtype(orig_dtype, jnp.integer) and jnp.dtype(orig_dtype).itemsize <= 4:
        out_dtype = jnp.float32           # native integer DMA, cast in-kernel
    else:
        x = x.astype(jnp.float32)         # bool / int64 / exotic (rare path)
        out_dtype = jnp.float32

    final_dtype = out_dtype if restore_dtype is None else restore_dtype
    if n == 0:
        return jnp.zeros(orig_shape, final_dtype)

    in_dtype = x.dtype

    # Tiny tensors: launch + pipeline-fill overhead dominates; let XLA fuse.
    if n < TINY_N_FALLBACK:
        xf = jnp.clip(x.astype(jnp.float32), -1e18, 1e18)
        y = (xf * lax.rsqrt(1.0 + xf * xf)).astype(out_dtype)
        return y.astype(final_dtype)

    in_itemsize = jnp.dtype(in_dtype).itemsize
    out_itemsize = jnp.dtype(out_dtype).itemsize
    max_itemsize = max(in_itemsize, out_itemsize)
    min_rows = max(_min_sublanes(in_dtype), _min_sublanes(out_dtype))

    # Flat -> (rows, LANES) lane-dense slab.  Pad only when n % LANES != 0.
    x_flat = jnp.ravel(x)
    padded_n = _round_up(n, LANES)
    needs_pad = padded_n != n
    if needs_pad:
        x_flat = jnp.pad(x_flat, (0, padded_n - n))
    rows = padded_n // LANES
    x2d = x_flat.reshape(rows, LANES)

    # Block rows targeting ~block_bytes per buffer (sized by the wider dtype).
    tile_rows = (block_bytes // (LANES * max_itemsize)) // min_rows * min_rows
    tile_rows = max(min_rows, tile_rows)

    if tile_rows >= rows:
        # Whole slab fits in one block.
        n_tc = _tensorcores_per_device()
        slab_bytes = rows * LANES * max_itemsize
        max_steps_by_size = slab_bytes // MIN_SPLIT_BLOCK_BYTES
        max_steps_by_rows = rows // min_rows
        if n_tc > 1 and max_steps_by_rows >= 2 and max_steps_by_size >= 2:
            # Dual-TC parts: a few even grid steps restores double-buffer
            # overlap and balances the two TensorCores.
            target_steps = min(4 * n_tc, max_steps_by_rows, max_steps_by_size)
            if target_steps % 2:
                target_steps -= 1
            target_steps = max(2, target_steps)
            tile_rows = _round_up(pl.cdiv(rows, target_steps), min_rows)
        else:
            # Single-TC (v5e/v6e) or tiny slab: one full-array block (allowed
            # even when rows is not a multiple of the min tile).
            tile_rows = rows

    grid_n = pl.cdiv(rows, tile_rows)   # ragged last block is masked by Pallas

    cost = pl.CostEstimate(
        flops=5 * n,
        transcendentals=n,
        bytes_accessed=n * (in_itemsize + out_itemsize),
    )

    out2d = pl.pallas_call(
        _sin_atan_kernel,
        out_shape=jax.ShapeDtypeStruct((rows, LANES), out_dtype),
        grid_spec=pltpu.PrefetchScalarGridSpec(
            num_scalar_prefetch=0,
            grid=(grid_n,),
            in_specs=[pl.BlockSpec((tile_rows, LANES), lambda i: (i, 0))],
            out_specs=pl.BlockSpec((tile_rows, LANES), lambda i: (i, 0)),
        ),
        compiler_params=pltpu.CompilerParams(
            dimension_semantics=("parallel",),
            vmem_limit_bytes=VMEM_LIMIT_BYTES,
        ),
        cost_estimate=cost,
    )(x2d)

    if needs_pad:
        y = out2d.reshape(-1)[:n].reshape(orig_shape)
    else:
        y = out2d.reshape(orig_shape)
    if restore_dtype is not None:
        y = y.astype(restore_dtype)
    return y


if __name__ == "__main__":
    key = jax.random.PRNGKey(0)

    # Small NCHW input consistent with a typical conv-feature tensor.
    x = jax.random.normal(key, (2, 4, 16, 16), dtype=jnp.float32) * 3.0
    y = jax.block_until_ready(continuous_function(x))
    y_ref = jnp.sin(jnp.arctan(x))
    assert y.shape == x.shape and y.dtype == x.dtype
    assert jnp.max(jnp.abs(y - y_ref)) < 1e-5

    # NaN propagation through the pre-square clamp.
    x_nan = x.at[0, 0, 0, 0].set(jnp.nan)
    y_nan = jax.block_until_ready(continuous_function(x_nan))
    assert bool(jnp.isnan(y_nan[0, 0, 0, 0]))

    # Ragged size (n % 256 != 0): exercises the lane-padding / slice path.
    k2 = jax.random.PRNGKey(0)
    x2 = jax.random.normal(k2, (3, 5, 7, 11), dtype=jnp.float32) * 2.0
    y2 = jax.block_until_ready(continuous_function(x2))
    y2_ref = jnp.sin(jnp.arctan(x2))
    assert y2.shape == x2.shape and y2.dtype == x2.dtype
    assert jnp.max(jnp.abs(y2 - y2_ref)) < 1e-5

    # bf16 smoke test: native-dtype DMA, in-kernel upcast/downcast.
    x3 = (jax.random.normal(k2, (2, 4, 16, 16), dtype=jnp.float32) * 3.0).astype(jnp.bfloat16)
    y3 = jax.block_until_ready(continuous_function(x3))
    y3_ref = jnp.sin(jnp.arctan(x3.astype(jnp.float32))).astype(jnp.bfloat16)
    assert y3.shape == x3.shape and y3.dtype == jnp.bfloat16
    assert jnp.max(jnp.abs(y3.astype(jnp.float32) - y3_ref.astype(jnp.float32))) < 2e-2

    # Integer input: native int32 DMA into the kernel, float32 output (torch parity).
    xi = jax.random.randint(key, (2, 4, 16, 16), -5, 6, dtype=jnp.int32)
    yi = jax.block_until_ready(continuous_function(xi))
    yi_ref = jnp.sin(jnp.arctan(xi.astype(jnp.float32)))
    assert yi.shape == xi.shape and yi.dtype == jnp.float32
    assert jnp.max(jnp.abs(yi - yi_ref)) < 1e-5

    # Multi-step grid with a ragged last block (small forced block size).
    x4 = jax.random.normal(k2, (40, 300), dtype=jnp.float32)
    y4 = jax.block_until_ready(continuous_function(x4, block_bytes=16 * 256 * 4))
    y4_ref = jnp.sin(jnp.arctan(x4))
    assert y4.shape == x4.shape and y4.dtype == x4.dtype
    assert jnp.max(jnp.abs(y4 - y4_ref)) < 1e-5

    print("KERNEL_OK")
</pallas_src>

<mosaic_0001>
module attributes {stable_mosaic.version = 11 : i64} {
  func.func @_sin_atan_kernel(%arg0: i32, %arg1: memref<8x256xf32, #tpu.memory_space<vmem>>, %arg2: memref<8x256xf32, #tpu.memory_space<vmem>>) attributes {dimension_semantics = [#tpu.dimension_semantics<parallel>], iteration_bounds = array<i64: 1>, scalar_prefetch = 0 : i64, scratch_operands = 0 : i64, tpu.core_type = #tpu.core_type<tc>, window_params = [{transform_indices = @transform_0, window_bounds = array<i64: 8, 256>}, {transform_indices = @transform_1, window_bounds = array<i64: 8, 256>}]} {
    %c0 = arith.constant 0 : index
    %c0_0 = arith.constant 0 : index
    %0 = vector.load %arg1[%c0, %c0_0] : memref<8x256xf32, #tpu.memory_space<vmem>>, vector<8x256xf32>
    %cst = arith.constant -9.99999984E+17 : f32
    %cst_1 = arith.constant 9.99999984E+17 : f32
    %1 = vector.broadcast %cst : f32 to vector<8x256xf32>
    %2 = arith.maximumf %1, %0 : vector<8x256xf32>
    %3 = vector.broadcast %cst_1 : f32 to vector<8x256xf32>
    %4 = arith.minimumf %3, %2 : vector<8x256xf32>
    %5 = arith.mulf %4, %4 : vector<8x256xf32>
    %cst_2 = arith.constant 1.000000e+00 : f32
    %6 = vector.broadcast %cst_2 : f32 to vector<8x256xf32>
    %7 = arith.addf %6, %5 : vector<8x256xf32>
    %8 = math.rsqrt %7 : vector<8x256xf32>
    %9 = arith.mulf %4, %8 : vector<8x256xf32>
    %c0_3 = arith.constant 0 : index
    %c0_4 = arith.constant 0 : index
    %10 = vector.load %arg2[%c0_3, %c0_4] : memref<8x256xf32, #tpu.memory_space<vmem>>, vector<8x256xf32>
    tpu.vector_store %arg2[%c0_3, %c0_4], %9 {strides = array<i32>} : memref<8x256xf32, #tpu.memory_space<vmem>>, vector<8x256xf32>,
    return
  }
  func.func @transform_0(%arg0: i32) -> (i32, i32) {
    %c0_i32 = arith.constant 0 : i32
    %c0_i32_0 = arith.constant 0 : i32
    return %arg0, %c0_i32 : i32, i32
  }
  func.func @transform_1(%arg0: i32) -> (i32, i32) {
    %c0_i32 = arith.constant 0 : i32
    %c0_i32_0 = arith.constant 0 : i32
    return %arg0, %c0_i32 : i32, i32
  }
}

</mosaic_0001>

<bundles_post_ra>
// kernel: tpu_custom_call.1
= control target key start
LH: loop header
LB: loop body
LE: loop exit
PB: predicated region body
PF: predicated region fallthrough
CT: control target
= control target key end

     0   :  { %6 = vsyncpa [#allocation3], 0  ;;  %s144_s0 = inlined_call_operand.hbm [shape: f32[8,256], index: 0, kind: input, shape index: {}]   ;;  %s145_s1 = inlined_call_operand.hbm [shape: f32[8,256], index: 1, kind: output, shape index: {}]  }
   0x1   :  { %7 = vsyncpa [#allocation4], 0  ;;  %s108_s6 = smov [#allocation2]   ;;  %s60_s10 = scalar_lea.hbm %s144_s0, 256 }
   0x2   :  { %s14_s7 = sshll.u32 %s108_s6, 4  ;;  %p61_p0 = scmp.ne.s32.totalorder %s144_s0, %s60_s10  ;;  %s15_s7 = int_to_ptr.vmem [resolvable:$true] %s14_s7 }
   0x3   :  { %p64_p1 = scmp.lt.u32.totalorder %s60_s10, %s144_s0 }
   0x5   :  { %p66_p2 = pnand %p64_p1, %p61_p0 }
   0x7   :  { %69 = shalt.err (!%p66_p2)
}
   0x8   :  { %s70_s15 = scalar_lea.vmem %s15_s7, 256  ;;  %p75_p4 = scmp.lt.s32.totalorder %s15_s7, %s15_s7 }
   0x9   :  { %p71_p3 = scmp.ne.s32.totalorder %s15_s7, %s70_s15  ;;  %p76_p5 = scmp.lt.s32.totalorder %s70_s15, %s70_s15 }
   0xb   :  { %p77_p6 = por %p76_p5, %p75_p4 }
   0xd   :  { %p78_p7 = pnand %p77_p6, %p71_p3 }
   0xf   :  { %81 = shalt.err (!%p78_p7)
}
  0x10   :  { %17 = dma.hbm_to_vmem [thread:$0]  %s144_s0, 256, %s15_s7, [#allocation3]  }
  0x11   :  { %104 = dma.done.wait [#allocation3], 256  }
  0x12   :  { %105 = vsyncadd [#allocation3], 4294967040  ;;  %v21_v0 = vld [vmem:[#allocation2] sm:$0xff]  ;;  %v22_v1 = vld [vmem:[#allocation2 + $0x8] sm:$0xff]  ;;  %s109_s18 = smov [#allocation5]  }
  0x13   :  { %v52_v2 = vclamps-f32 %v21_v0, 1e+18  ;;  %v53_v3 = vclamps-f32 %v22_v1, 1e+18  ;;  %s43_s19 = sshll.u32 %s109_s18, 4  ;;  %s44_s19 = int_to_ptr.vmem [resolvable:$true] %s43_s19 }
  0x14   :  { %s82_s0 = scalar_lea.vmem %s44_s19, 256  ;;  %p87_p9 = scmp.lt.s32.totalorder %s44_s19, %s44_s19 }
  0x15   :  { %v27_v4 = vmul.f32 %v52_v2, %v52_v2  ;;  %v28_v5 = vmul.f32 %v53_v3, %v53_v3  ;;  %p83_p8 = scmp.ne.s32.totalorder %s44_s19, %s82_s0  ;;  %p88_p10 = scmp.lt.s32.totalorder %s82_s0, %s82_s0 }
  0x17   :  { %v29_v6 = vadd.f32 1.0, %v27_v4  ;;  %v30_v7 = vadd.f32 1.0, %v28_v5  ;;  %p89_p11 = por %p88_p10, %p87_p9 }
  0x19   :  { %56 = vrsqrt.f32 %v29_v6  ;;  %p90_p12 = pnand %p89_p11, %p83_p8 }
  0x1a   :  { %58 = vrsqrt.f32 %v30_v7 }
  0x23   :  { %v57_v8 = vpop.eup %56 }
  0x24   :  { %v59_v9 = vpop.eup %58  ;;  %v33_v10 = vmul.f32 %v57_v8, %v52_v2 }
  0x25   :  { %v34_v11 = vmul.f32 %v59_v9, %v53_v3 }
  0x26   :  { %35 = vst [vmem:[#allocation5] sm:$0xff] %v33_v10 }
  0x27   :  { %36 = vst [vmem:[#allocation5 + $0x8] sm:$0xff] %v34_v11 }
  0x28   :  { %93 = shalt.err (!%p90_p12)
}
  0x29   :  { %s94_s22 = scalar_lea.hbm %s145_s1, 256 }
  0x2a   :  { %p95_p13 = scmp.ne.s32.totalorder %s145_s1, %s94_s22  ;;  %p98_p0 = scmp.lt.u32.totalorder %s94_s22, %s145_s1 }
  0x2c   :  { %p100_p1 = pnand %p98_p0, %p95_p13 }
  0x2e   :  { %103 = shalt.err (!%p100_p1)
}
  0x2f   :  { %46 = dma.vmem_to_hbm [thread:$0]  %s44_s19, 256, %s145_s1, [#allocation4]  }
  0x30   :  { %106 = dma.done.wait [#allocation4], 256  }
  0x31   :  { %107 = vsyncadd [#allocation4], 4294967040 }
  0x32   :  { %50 = vsyncpa [#allocation3], 1 }
  0x33   :  { %51 = vsyncpa [#allocation4], 1 }

</bundles_post_ra>
